<compile_context>
chip_gen: v7x
topology: tpu7x:2x2x1
jax: 0.10.0
libtpu: 0.0.40
codegen_flags: <defaults>
</compile_context>

<pallas_src>
import math

import jax
import jax.numpy as jnp
from jax import lax
from jax.experimental import pallas as pl
from jax.experimental.pallas import tpu as pltpu


def _sublane_multiple(dtype) -> int:
    """Minimum second-to-last tile dim for this dtype (sublane packing)."""
    itemsize = jnp.dtype(dtype).itemsize
    if itemsize >= 4:
        return 8
    if itemsize == 2:
        return 16
    return 32


def _make_pe_table(max_len: int, d_model: int) -> jnp.ndarray:
    """WeNet-style sinusoidal positional-encoding table, shape (max_len, d_model)."""
    position = jnp.arange(max_len, dtype=jnp.float32)[:, None]             # (L, 1)
    div_term = jnp.exp(
        jnp.arange(0, d_model, 2, dtype=jnp.float32)
        * -(math.log(10000.0) / d_model))                                  # (d/2,)
    pe_sin = jnp.sin(position * div_term)                                  # (L, d/2)
    pe_cos = jnp.cos(position * div_term)                                  # (L, d/2)
    return jnp.stack([pe_sin, pe_cos], axis=-1).reshape(max_len, d_model)  # interleave


def _fused_kernel(inv_d: float, eps: float):
    def kernel(x_ref, w_ref, p_ref, pe_ref, o_ref):
        # x_ref : (tq, Din)   w_ref : (Din, Dout)
        # p_ref : (3, Dout)   pe_ref: (tq, Dout)   o_ref: (tq, Dout)
        # Linear on the MXU: operands in their stored dtype, f32 accumulation.
        y = jnp.dot(x_ref[...], w_ref[...], preferred_element_type=jnp.float32)
        p = p_ref[...].astype(jnp.float32)          # rows: [bias; gamma*xs; beta*xs]
        y = y + p[0:1, :]
        # One-pass LayerNorm statistics over the feature axis.
        s1 = jnp.sum(y, axis=-1, keepdims=True)
        s2 = jnp.sum(y * y, axis=-1, keepdims=True)
        mean = s1 * inv_d
        var = jnp.maximum(s2 * inv_d - mean * mean, 0.0)   # guard f32 cancellation
        r = lax.rsqrt(var + eps)                    # (tq, 1) -> EUP slot
        # Dropout: identity in eval mode.
        # TODO(synk): training-mode dropout (pltpu.prng_seed / prng_random_bits mask).
        # gamma/beta already carry the sqrt(d_model) PE scale (folded in wrapper).
        out = (y - mean) * r * p[1:2, :] + (p[2:3, :] + pe_ref[...].astype(jnp.float32))
        o_ref[...] = out.astype(o_ref.dtype)        # single cast, at the store
    return kernel


def linear_no_subsampling(x, x_mask, weight, bias, ln_gamma, ln_beta, pe_table,
                          offset: int = 0, *, time_tile: int = 512,
                          matmul_dtype=None,
                          vmem_budget_bytes: int = 24 * 1024 * 1024):
    """Forward pass of LinearNoSubsampling.

    Args:
      x:        (B, T, idim)
      x_mask:   (B, 1, T) bool   -- passed through unchanged
      weight:   (odim, idim)     -- torch Linear weight convention
      bias:     (odim,)
      ln_gamma: (odim,)
      ln_beta:  (odim,)
      pe_table: (max_len, odim)  -- sinusoidal PE table
      offset:   int position offset
      matmul_dtype: optional reduced-precision MXU operand dtype (e.g.
        jnp.bfloat16 on v5e); f32 accumulation is kept either way.
    Returns:
      (out (B, T, odim), pos_emb (1, T, odim), x_mask)
    """
    B, T, Din = x.shape
    Dout = weight.shape[0]
    xscale = math.sqrt(Dout)
    eps = 1e-5

    if isinstance(offset, int):
        assert offset + T <= pe_table.shape[0], (
            "positional-encoding table shorter than offset + T")
    pos_emb = lax.dynamic_slice_in_dim(pe_table, offset, T, axis=0)        # (T, Dout)

    # Optional reduced-precision MXU operands (mainly a v5e win).
    x_in = x if matmul_dtype is None else x.astype(matmul_dtype)
    w_t = weight.T if matmul_dtype is None else weight.T.astype(matmul_dtype)  # (Din, Dout)

    # Fold sqrt(d_model) (the PE xscale) into the LN affine params; one stacked
    # (3, Dout) resident operand instead of three separate DMAs.
    params = jnp.stack(
        [bias, ln_gamma * xscale, ln_beta * xscale], axis=0).astype(jnp.float32)

    # pe streams in x.dtype; the kernel epilogue upcasts to f32.
    pe_s = pos_emb.astype(x.dtype)

    # Time tile: dtype-aware sublane multiple, never larger than T (the tail
    # tile is partial and masked by Pallas), shrunk to fit a per-step VMEM
    # budget so the same tiling is portable to v7x's 64 MiB VMEM.
    sub = _sublane_multiple(x_in.dtype)
    tq = T if T <= sub else min(time_tile, (T // sub) * sub)

    x_bytes = jnp.dtype(x_in.dtype).itemsize
    pe_bytes = jnp.dtype(pe_s.dtype).itemsize
    o_bytes = jnp.dtype(x.dtype).itemsize

    def _per_step_vmem(t):
        stream = 2 * t * (Din * x_bytes + Dout * pe_bytes + Dout * o_bytes)  # double-buffered
        resident = Din * Dout * x_bytes + 3 * Dout * 4                       # single-buffered
        epilogue = 2 * t * Dout * 4                                          # f32 temporaries
        return stream + resident + epilogue

    while tq > sub and _per_step_vmem(tq) > vmem_budget_bytes:
        tq = max(sub, (tq // 2 // sub) * sub)

    # Time tiles outer, batch inner: the pe block index (ti, 0) is constant
    # across the inner batch axis, so its tile is fetched once per time tile
    # instead of once per (time tile, batch) step.  Both axes are independent
    # ("parallel") so v7x's two TensorCores can split the grid.
    grid = (pl.cdiv(T, tq), B)

    out = pl.pallas_call(
        _fused_kernel(1.0 / Dout, eps),
        out_shape=jax.ShapeDtypeStruct((B, T, Dout), x.dtype),
        grid_spec=pl.GridSpec(
            grid=grid,
            in_specs=[
                pl.BlockSpec((None, tq, Din), lambda ti, bi: (bi, ti, 0)),   # x
                pl.BlockSpec((Din, Dout), lambda ti, bi: (0, 0),
                             pipeline_mode=pl.Buffered(1)),                  # W^T (resident)
                pl.BlockSpec((3, Dout), lambda ti, bi: (0, 0),
                             pipeline_mode=pl.Buffered(1)),                  # fused params
                pl.BlockSpec((tq, Dout), lambda ti, bi: (ti, 0)),            # pe tile
            ],
            out_specs=pl.BlockSpec((None, tq, Dout), lambda ti, bi: (bi, ti, 0)),
        ),
        compiler_params=pltpu.CompilerParams(
            dimension_semantics=("parallel", "parallel"),
            vmem_limit_bytes=32 * 1024 * 1024,
        ),
    )(x_in, w_t, params, pe_s)

    return out, pos_emb[None, :, :], x_mask


def _reference(x, weight, bias, gamma, beta, pe_table, offset=0):
    """Pure-JAX reference for correctness checking."""
    Dout = weight.shape[0]
    y = jnp.einsum("btd,od->bto", x, weight) + bias
    mean = y.mean(-1, keepdims=True)
    var = ((y - mean) ** 2).mean(-1, keepdims=True)
    y = (y - mean) / jnp.sqrt(var + 1e-5) * gamma + beta
    T = x.shape[1]
    pe = lax.dynamic_slice_in_dim(pe_table, offset, T, axis=0)
    return y * math.sqrt(Dout) + pe[None]


if __name__ == "__main__":
    key = jax.random.PRNGKey(0)
    k_x, k_w, k_b, k_g, k_bt = jax.random.split(key, 5)

    B, T, idim, odim = 2, 8, 32, 32
    max_len = 64

    x = jax.random.normal(k_x, (B, T, idim), dtype=jnp.float32)
    x_mask = jnp.ones((B, 1, T), dtype=jnp.bool_)

    # Deterministic synthetic parameters (Linear + LayerNorm).
    weight = jax.random.normal(k_w, (odim, idim), dtype=jnp.float32) * (1.0 / math.sqrt(idim))
    bias = jax.random.normal(k_b, (odim,), dtype=jnp.float32) * 0.02
    ln_gamma = 1.0 + 0.1 * jax.random.normal(k_g, (odim,), dtype=jnp.float32)
    ln_beta = 0.1 * jax.random.normal(k_bt, (odim,), dtype=jnp.float32)

    pe_table = _make_pe_table(max_len, odim)

    out, pos_emb, mask_out = linear_no_subsampling(
        x, x_mask, weight, bias, ln_gamma, ln_beta, pe_table, offset=0)
    out = jax.block_until_ready(out)

    ref = _reference(x, weight, bias, ln_gamma, ln_beta, pe_table, offset=0)
    assert out.shape == (B, T, odim)
    assert pos_emb.shape == (1, T, odim)
    assert mask_out.shape == (B, 1, T)
    assert jnp.allclose(out, ref, atol=2e-4, rtol=2e-4), "mismatch vs reference"

    print("KERNEL_OK")
</pallas_src>

<mosaic_0001>
module attributes {stable_mosaic.version = 11 : i64} {
  func.func @kernel(%arg0: i32, %arg1: i32, %arg2: memref<1x8x32xf32, #tpu.memory_space<vmem>>, %arg3: memref<32x32xf32, #tpu.memory_space<vmem>>, %arg4: memref<3x32xf32, #tpu.memory_space<vmem>>, %arg5: memref<8x32xf32, #tpu.memory_space<vmem>>, %arg6: memref<1x8x32xf32, #tpu.memory_space<vmem>>) attributes {dimension_semantics = [#tpu.dimension_semantics<parallel>, #tpu.dimension_semantics<parallel>], iteration_bounds = array<i64: 1, 2>, scalar_prefetch = 0 : i64, scratch_operands = 0 : i64, tpu.core_type = #tpu.core_type<tc>, window_params = [{transform_indices = @transform_0, window_bounds = array<i64: 1, 8, 32>}, {pipeline_mode = #tpu.pipeline_mode<synchronous>, transform_indices = @transform_1, window_bounds = array<i64: 32, 32>}, {pipeline_mode = #tpu.pipeline_mode<synchronous>, transform_indices = @transform_2, window_bounds = array<i64: 3, 32>}, {transform_indices = @transform_3, window_bounds = array<i64: 8, 32>}, {transform_indices = @transform_4, window_bounds = array<i64: 1, 8, 32>}]} {
    %c0 = arith.constant 0 : index
    %c0_0 = arith.constant 0 : index
    %c0_1 = arith.constant 0 : index
    %0 = vector.load %arg2[%c0, %c0_0, %c0_1] : memref<1x8x32xf32, #tpu.memory_space<vmem>>, vector<1x8x32xf32>
    %1 = vector.shape_cast %0 : vector<1x8x32xf32> to vector<8x32xf32>
    %c0_2 = arith.constant 0 : index
    %c0_3 = arith.constant 0 : index
    %2 = vector.load %arg3[%c0_2, %c0_3] : memref<32x32xf32, #tpu.memory_space<vmem>>, vector<32x32xf32>
    %cst = arith.constant dense<0.000000e+00> : vector<8x32xf32>
    %3 = tpu.matmul %1, %2, %cst {dimension_numbers = #tpu.dot_dimension_numbers<[1], [0], [0], [1], [0, 0, 1, 1], [], []>} : vector<8x32xf32>, vector<32x32xf32>, vector<8x32xf32> -> vector<8x32xf32>
    %c0_4 = arith.constant 0 : index
    %c0_5 = arith.constant 0 : index
    %4 = vector.load %arg4[%c0_4, %c0_5] : memref<3x32xf32, #tpu.memory_space<vmem>>, vector<3x32xf32>
    %5 = vector.extract_strided_slice %4 {offsets = [0, 0], sizes = [1, 32], strides = [1, 1]} : vector<3x32xf32> to vector<1x32xf32>
    %6 = vector.broadcast %5 : vector<1x32xf32> to vector<8x32xf32>
    %7 = arith.addf %3, %6 : vector<8x32xf32>
    %cst_6 = arith.constant dense<0.000000e+00> : vector<8xf32>
    %8 = vector.multi_reduction <add>, %7, %cst_6 [1] : vector<8x32xf32> to vector<8xf32>
    %9 = vector.shape_cast %8 : vector<8xf32> to vector<8x1xf32>
    %10 = arith.mulf %7, %7 : vector<8x32xf32>
    %cst_7 = arith.constant dense<0.000000e+00> : vector<8xf32>
    %11 = vector.multi_reduction <add>, %10, %cst_7 [1] : vector<8x32xf32> to vector<8xf32>
    %12 = vector.shape_cast %11 : vector<8xf32> to vector<8x1xf32>
    %cst_8 = arith.constant 3.125000e-02 : f32
    %13 = vector.broadcast %cst_8 : f32 to vector<8x1xf32>
    %14 = arith.mulf %9, %13 : vector<8x1xf32>
    %cst_9 = arith.constant 3.125000e-02 : f32
    %15 = vector.broadcast %cst_9 : f32 to vector<8x1xf32>
    %16 = arith.mulf %12, %15 : vector<8x1xf32>
    %17 = arith.mulf %14, %14 : vector<8x1xf32>
    %18 = arith.subf %16, %17 : vector<8x1xf32>
    %cst_10 = arith.constant 0.000000e+00 : f32
    %19 = vector.broadcast %cst_10 : f32 to vector<8x1xf32>
    %20 = arith.maximumf %18, %19 : vector<8x1xf32>
    %cst_11 = arith.constant 9.99999974E-6 : f32
    %21 = vector.broadcast %cst_11 : f32 to vector<8x1xf32>
    %22 = arith.addf %20, %21 : vector<8x1xf32>
    %23 = math.rsqrt %22 : vector<8x1xf32>
    %24 = vector.broadcast %14 : vector<8x1xf32> to vector<8x32xf32>
    %25 = arith.subf %7, %24 : vector<8x32xf32>
    %26 = vector.broadcast %23 : vector<8x1xf32> to vector<8x32xf32>
    %27 = arith.mulf %25, %26 : vector<8x32xf32>
    %28 = vector.extract_strided_slice %4 {offsets = [1, 0], sizes = [1, 32], strides = [1, 1]} : vector<3x32xf32> to vector<1x32xf32>
    %29 = vector.broadcast %28 : vector<1x32xf32> to vector<8x32xf32>
    %30 = arith.mulf %27, %29 : vector<8x32xf32>
    %31 = vector.extract_strided_slice %4 {offsets = [2, 0], sizes = [1, 32], strides = [1, 1]} : vector<3x32xf32> to vector<1x32xf32>
    %c0_12 = arith.constant 0 : index
    %c0_13 = arith.constant 0 : index
    %32 = vector.load %arg5[%c0_12, %c0_13] : memref<8x32xf32, #tpu.memory_space<vmem>>, vector<8x32xf32>
    %33 = vector.broadcast %31 : vector<1x32xf32> to vector<8x32xf32>
    %34 = arith.addf %33, %32 : vector<8x32xf32>
    %35 = arith.addf %30, %34 : vector<8x32xf32>
    %c0_14 = arith.constant 0 : index
    %c0_15 = arith.constant 0 : index
    %c0_16 = arith.constant 0 : index
    %36 = vector.load %arg6[%c0_14, %c0_15, %c0_16] : memref<1x8x32xf32, #tpu.memory_space<vmem>>, vector<1x8x32xf32>
    %37 = vector.shape_cast %36 : vector<1x8x32xf32> to vector<8x32xf32>
    %38 = vector.shape_cast %35 : vector<8x32xf32> to vector<1x8x32xf32>
    tpu.vector_store %arg6[%c0_14, %c0_15, %c0_16], %38 {strides = array<i32>} : memref<1x8x32xf32, #tpu.memory_space<vmem>>, vector<1x8x32xf32>,
    return
  }
  func.func @transform_0(%arg0: i32, %arg1: i32) -> (i32, i32, i32) {
    %c0_i32 = arith.constant 0 : i32
    %c0_i32_0 = arith.constant 0 : i32
    return %arg1, %arg0, %c0_i32 : i32, i32, i32
  }
  func.func @transform_1(%arg0: i32, %arg1: i32) -> (i32, i32) {
    %c0_i32 = arith.constant 0 : i32
    %c0_i32_0 = arith.constant 0 : i32
    %c0_i32_1 = arith.constant 0 : i32
    return %c0_i32, %c0_i32_0 : i32, i32
  }
  func.func @transform_2(%arg0: i32, %arg1: i32) -> (i32, i32) {
    %c0_i32 = arith.constant 0 : i32
    %c0_i32_0 = arith.constant 0 : i32
    %c0_i32_1 = arith.constant 0 : i32
    return %c0_i32, %c0_i32_0 : i32, i32
  }
  func.func @transform_3(%arg0: i32, %arg1: i32) -> (i32, i32) {
    %c0_i32 = arith.constant 0 : i32
    %c0_i32_0 = arith.constant 0 : i32
    return %arg0, %c0_i32 : i32, i32
  }
  func.func @transform_4(%arg0: i32, %arg1: i32) -> (i32, i32, i32) {
    %c0_i32 = arith.constant 0 : i32
    %c0_i32_0 = arith.constant 0 : i32
    return %arg1, %arg0, %c0_i32 : i32, i32, i32
  }
}

</mosaic_0001>

<bundles_post_ra>
// kernel: tpu_custom_call.1
= control target key start
LH: loop header
LB: loop body
LE: loop exit
PB: predicated region body
PF: predicated region fallthrough
CT: control target
= control target key end

     0   :  { %9 = vsyncpa [#allocation3], 0  ;;  %s1116_s0 = inlined_call_operand.hbm [shape: f32[2,8,32], index: 0, kind: input, shape index: {}]   ;;  %s1117_s1 = inlined_call_operand.hbm [shape: f32[32,32], index: 1, kind: input, shape index: {}]   ;;  %s1118_s2 = inlined_call_operand.hbm [shape: f32[3,32], index: 2, kind: input, shape index: {}]   ;;  %s1119_s3 = inlined_call_operand.vmem [shape: f32[8,32], index: 3, kind: input, shape index: {}]   ;;  %s1120_s4 = inlined_call_operand.hbm [shape: f32[2,8,32], index: 4, kind: output, shape index: {}]  }
   0x1   :  { %11 = vsyncpa [#allocation3 + $0x1], 0 }
   0x2   :  { %12 = vsyncpa [#allocation6], 0 }
   0x3   :  { %13 = vsyncpa [#allocation4], 0 }
   0x4   :  { %15 = vsyncpa [#allocation4 + $0x1], 0  ;;  %s855_s15 = smov 0   ;;  %s857_s16 = smov 0  }
   0x5   :  { %s859_s17 = smov 0   ;;  %s861_s18 = smov 0  }
   0x6   :  { %s863_s19 = smov 0   ;;  %s865_s20 = smov 0  }
   0x7 LB: > { %s516_s21 = sadd.s32 4294967295, %s819_s20   ;;  %s517_s22 = sadd.s32 4294967294, %s819_s20   ;;  %s819_s20 = sphi %s865_s20, %s21_s20   ;;  %s815_s19 = sphi %s863_s19, %s1142_s19   ;;  %s811_s18 = sphi %s861_s18, %s1141_s18   ;;  %s807_s17 = sphi %s859_s17, %s1140_s17   ;;  %s803_s16 = sphi %s857_s16, %s1139_s16   ;;  %s799_s15 = sphi %s855_s15, %s1138_s15  }
   0x8   : > { %p55_p0 = scmp.ne.s32.totalorder %s803_s16, %s799_s15  ;;  %p889_p1 = scmp.eq.s32.totalorder %s516_s21, 0 }
   0x9   : > { %p893_p2 = scmp.eq.s32.totalorder %s516_s21, 1  ;;  %p155_p3 = scmp.eq.s32.totalorder %s517_s22, 1 }
   0xa   : > { %s1125_s23 = scalar_select %p889_p1, 1, 0 }
   0xb   : > { %p899_p4 = por %p889_p1, %p55_p0  ;;  %p518_p5 = scmp.ge.s32.totalorder %s819_s20, 1 }
   0xc   : > { %p904_p6 = por %p155_p3, %p55_p0  ;;  %p162_p7 = scmp.lt.s32.totalorder %s819_s20, 3 }
   0xd   : > { %s1127_s25 = scalar_select %p899_p4, 1, 0 }
   0xe   : > { %s1128_s26 = scalar_select %p904_p6, 1, 0 }
   0xf   : > { %p909_p8 = pnand %p518_p5, %p162_p7  ;;  %s821_s28 = smov [#allocation5]  }
  0x10   : > { %s174_s29 = sshll.u32 %s821_s28, 4  ;;  %s822_s5 = smov [#allocation7]   ;;  %s913_s29 = int_to_ptr.vmem [resolvable:$true] %s174_s29 }
  0x11   : > { %p569_p9 = pneg %p909_p8  ;;  %s188_s6 = sshll.u32 %s822_s5, 4  ;;  %s924_s6 = int_to_ptr.vmem [resolvable:$true] %s188_s6 }
  0x12   : > { %s647_s9 = scalar_lea.hbm %s1117_s1, 512 }
  0x13   : > { %p920_p11 = pnand %p569_p9, %p889_p1  ;;  %p648_p12 = scmp.ne.s32.totalorder %s1117_s1, %s647_s9 }
  0x14   : > { %p654_p5 = scmp.lt.u32.totalorder %s647_s9, %s1117_s1 }
  0x15   : > { %p649_p13 = pneg %p920_p11 }
  0x17   : > { %p650_p0 = pnand %p649_p13, %p648_p12 }
  0x19   : > { %p651_p3 = pneg %p650_p0 }
  0x1b   : > { %p656_p7 = pnand %p654_p5, %p651_p3 }
  0x1d   : > { %659 = shalt.err (!%p656_p7)
}
  0x1e   : > { %s660_s14 = scalar_lea.vmem %s913_s29, 512  ;;  %p668_p1 = scmp.lt.s32.totalorder %s913_s29, %s913_s29 }
  0x1f   : > { %p661_p9 = scmp.ne.s32.totalorder %s913_s29, %s660_s14  ;;  %p669_p12 = scmp.lt.s32.totalorder %s660_s14, %s660_s14 }
  0x21   : > { %p663_p10 = pnand %p661_p9, %p649_p13  ;;  %p670_p0 = por %p669_p12, %p668_p1 }
  0x23   : > { %p664_p6 = pneg %p663_p10 }
  0x25   : > { %p671_p4 = pnand %p670_p0, %p664_p6 }
  0x27   : > { %674 = shalt.err (!%p671_p4)
}
  0x28   : > { %s823_s21 = smov 128   ;;  %s824_s22 = smov 8  }
  0x29   : > { %572 = dma.hbm_to_vmem [thread:$0]  (!%p920_p11), %s1117_s1, 512, %s913_s29, [#allocation6], %s823_s21, %s823_s21, %s824_s22  }
  0x2a   : > { %s675_s9 = scalar_lea.hbm %s1118_s2, 64 }
  0x2b   : > { %p676_p1 = scmp.ne.s32.totalorder %s1118_s2, %s675_s9  ;;  %p682_p10 = scmp.lt.u32.totalorder %s675_s9, %s1118_s2 }
  0x2d   : > { %p678_p4 = pnand %p676_p1, %p649_p13 }
  0x2f   : > { %p679_p6 = pneg %p678_p4 }
  0x31   : > { %p684_p3 = pnand %p682_p10, %p679_p6 }
  0x33   : > { %687 = shalt.err (!%p684_p3)
}
  0x34   : > { %s688_s29 = scalar_lea.vmem %s924_s6, 64  ;;  %p696_p12 = scmp.lt.s32.totalorder %s924_s6, %s924_s6 }
  0x35   : > { %p689_p5 = scmp.ne.s32.totalorder %s924_s6, %s688_s29  ;;  %p697_p0 = scmp.lt.s32.totalorder %s688_s29, %s688_s29 }
  0x37   : > { %p691_p7 = pnand %p689_p5, %p649_p13  ;;  %p698_p1 = por %p697_p0, %p696_p12 }
  0x39   : > { %p692_p9 = pneg %p691_p7 }
  0x3b   : > { %p699_p4 = pnand %p698_p1, %p692_p9 }
  0x3d   : > { %702 = shalt.err (!%p699_p4)
}
  0x3e   : > { %575 = dma.hbm_to_vmem [thread:$0]  (!%p920_p11), %s1118_s2, 64, %s924_s6, [#allocation6]  }
  0x3f   : > { %s30_s22 = sadd.s32 1, %s815_s19  ;;  %s42_s28 = sadd.s32 1, %s807_s17 }
  0x40   : > { %p31_p13 = scmp.ge.s32.totalorder %s30_s22, 2  ;;  %p49_p6 = scmp.ne.s32.totalorder %s807_s17, %s803_s16 }
  0x41   : > { %p50_p10 = scmp.eq.s32.totalorder %s819_s20, 0  ;;  %p586_p3 = scmp.lt.s32.totalorder %s819_s20, 2 }
  0x42   : > { %s1144_s22 = smov (%p31_p13, %s30_s22), 0  ;;  %p988_p7 = por %p893_p2, %p49_p6 }
  0x43   : > { %p51_p5 = por %p50_p10, %p49_p6  ;;  %s37_s5 = ssub.s32 %s815_s19, %s1144_s22 }
  0x44   : > { %s1131_s30 = scalar_select %p988_p7, 1, 0 }
  0x45   : > { %s206_s7 = sand.u32 1, %s807_s17   ;;  %p40_p9 = scmp.eq.s32.totalorder %s37_s5, 0 }
  0x46   : > { %s523_s6 = sshll.u32 %s206_s7, 3  ;;  %s524_s8 = sshll.u32 %s815_s19, 7 }
  0x47   : > { %s997_s9 = scalar_select %p40_p9, %s807_s17, %s42_s28  }
  0x48   : > { %s1002_s12 = scalar_lea.hbm %s1116_s0, %s524_s8  ;;  %s210_s24 = scalar_lea.vmem [#allocation2], %s523_s6 }
  0x49   : > { %s218_s13 = sshll.u32 %s210_s24, 4  ;;  %p1006_p2 = pnand %p586_p3, %p51_p5  ;;  %s1010_s13 = int_to_ptr.vmem [resolvable:$true] %s218_s13 }
  0x4a   : > { %s207_s14 = scalar_lea.sflag [#allocation3], %s206_s7  ;;  %s703_s21 = scalar_lea.hbm %s1002_s12, 128 }
  0x4b   : > { %p704_p11 = scmp.ne.s32.totalorder %s1002_s12, %s703_s21  ;;  %p705_p12 = pneg %p1006_p2 }
  0x4c   : > { %s708_s6 = scalar_lea.hbm %s1116_s0, 256  ;;  %p709_p4 = scmp.lt.u32.totalorder %s1002_s12, %s1116_s0 }
  0x4d   : > { %p706_p0 = pnand %p705_p12, %p704_p11  ;;  %p710_p13 = scmp.lt.u32.totalorder %s708_s6, %s703_s21 }
  0x4e   : > { %p712_p10 = scmp.lt.u32.totalorder %s703_s21, %s1002_s12 }
  0x4f   : > { %p707_p1 = pneg %p706_p0  ;;  %p711_p6 = por %p710_p13, %p709_p4 }
  0x51   : > { %p713_p3 = por %p712_p10, %p711_p6 }
  0x53   : > { %p714_p5 = pnand %p713_p3, %p707_p1 }
  0x55   : > { %717 = shalt.err (!%p714_p5)
}
  0x56   : > { %s718_s7 = scalar_lea.vmem %s1010_s13, 128  ;;  %s825_s11 = smov [#allocation2]  }
  0x57   : > { %p719_p9 = scmp.ne.s32.totalorder %s1010_s13, %s718_s7  ;;  %s723_s24 = sshll.u32 %s825_s11, 4  ;;  %s724_s24 = int_to_ptr.vmem [resolvable:$false] %s723_s24 }
  0x58   : > { %s725_s28 = scalar_lea.vmem %s724_s24, 256  ;;  %p726_p7 = scmp.lt.s32.totalorder %s1010_s13, %s724_s24 }
  0x59   : > { %p721_p11 = pnand %p719_p9, %p705_p12  ;;  %p727_p4 = scmp.lt.s32.totalorder %s725_s28, %s718_s7 }
  0x5b   : > { %p722_p0 = pneg %p721_p11  ;;  %p728_p13 = por %p727_p4, %p726_p7 }
  0x5d   : > { %p729_p6 = pnand %p728_p13, %p722_p0 }
  0x5f   : > { %732 = shalt.err (!%p729_p6)
}
  0x60   : > { %579 = dma.hbm_to_vmem [thread:$0]  (!%p1006_p2), %s1002_s12, 128, %s1010_s13, %s207_s14  }
  0x61   : > { %227 = sbr.rel (%p909_p8) target bundleno = 519 (0x207), region = 36  ;;  %s1040_s21 = sand.u32 (!%p909_p8), 1, %s803_s16  }
  0x62   : > { %s526_s5 = sshll.u32 (!%p909_p8), %s1040_s21, 3  ;;  %s230_s6 = scalar_lea.sflag (!%p909_p8), [#allocation3], %s1040_s21 }
  0x63   : > { %s233_s8 = scalar_lea.vmem (!%p909_p8), [#allocation2], %s526_s5  ;;  %p1133_p7 = scmp.ne.s32.totalorder (!%p909_p8), %s1127_s25, 0 }
  0x68   : > { %786 = dma.done.wait (%p1133_p7), %s230_s6, 128  }
  0x69   : > { %788 = vsyncadd (%p1133_p7), %s230_s6, 4294967168  ;;  %p1134_p2 = scmp.ne.s32.totalorder %s1125_s23, 0 }
  0x6b   : > { %790 = dma.done.wait (%p1134_p2), [#allocation6], 576  }
  0x6c   : > { %792 = vsyncadd (%p1134_p2), [#allocation6], 4294966720  ;;  %v826_v0 = vmov 0.0|0.0   ;;  %vm827_vm0 = vmmov 0   ;;  %v828_v1 = vmov 0.0   ;;  %v275_v2 = vld [vmem:[#allocation5] sm:$0xff]  ;;  %v280_v9 = vlaneseq }
  0x6d   : > { %551 = vmatprep.subr.bf16.mxu0 %v826_v0  ;;  %548 = vmatprep.mubr.msk.f32.mxu0 %vm827_vm0, %v828_v1  ;;  %v276_v3 = vld [vmem:[#allocation5 + $0x8] sm:$0xff]  ;;  %v277_v4 = vld [vmem:[#allocation5 + $0x10] sm:$0xff]  ;;  %v278_v6 = vld [vmem:[#allocation5 + $0x18] sm:$0xff]  ;;  %vm284_vm1 = vcmask 261120   ;;  %s532_s27 = sshll.u32 %s811_s18, 7  ;;  %s269_s12 = scalar_lea.vmem [#allocation8], %s526_s5 }
  0x6e   : > { %v552_v5 = vpack.c.bf16 %v276_v3, %v275_v2  ;;  %v555_v7 = vpack.c.bf16 %v278_v6, %v277_v4  ;;  %v274_v8 = vld [vmem:[%s233_s8] sm:$0xff]  ;;  %v281_v10 = vshrl.u32 %v280_v9, 7  ;;  %v279_v12 = vld [vmem:[#allocation7] sm:$0x7]  ;;  %s402_s13 = sshll.u32 %s269_s12, 4  ;;  %s1066_s10 = scalar_lea.hbm %s1120_s4, %s532_s27  ;;  %s1068_s13 = int_to_ptr.vmem [resolvable:$true] %s402_s13 }
  0x6f   : > { %v379_v31 = vld [vmem:[%s1119_s3] sm:$0xff]  ;;  %s388_s7 = scalar_lea.sflag [#allocation4], %s1040_s21  ;;  %s733_s11 = scalar_lea.vmem %s1068_s13, 128 }
  0x70   : > { %553 = vmatpush3.bf16.msra.mxu0 %v552_v5  ;;  %v282_v11 = vsub.s32 0, %v281_v10  ;;  %v382_v28 = vsub.s32 2, %v281_v10  ;;  %v376_v29 = vsub.s32 1, %v281_v10  ;;  %p734_p8 = scmp.ne.s32.totalorder %s1068_s13, %s733_s11  ;;  %p1135_p12 = scmp.ne.s32.totalorder %s1131_s30, 0 }
  0x71   : > { %554 = vmatprep.subr.bf16.mxu0 %v826_v0  ;;  %s829_s18 = smov [#allocation8]  }
  0x72   : > { %v283_v13 = vrot.slane %v279_v12, %v282_v11  ;;  %v383_v30 = vrot.slane %v279_v12, %v382_v28  ;;  %v377_v32 = vrot.slane %v279_v12, %v376_v29  ;;  %p735_p1 = pnand %p734_p8, %p1135_p12  ;;  %s737_s24 = sshll.u32 %s829_s18, 4  ;;  %s738_s24 = int_to_ptr.vmem [resolvable:$false] %s737_s24 }
  0x73   : > { %s739_s28 = scalar_lea.vmem %s738_s24, 256  ;;  %p740_p3 = scmp.lt.s32.totalorder %s1068_s13, %s738_s24 }
  0x74   : > { %556 = vmatpush3.bf16.msra.mxu0 %v555_v7  ;;  %v384_v35 = vadd.f32 %v383_v30, %v379_v31  ;;  %p736_p10 = pneg %p735_p1  ;;  %p741_p5 = scmp.lt.s32.totalorder %s739_s28, %s733_s11 }
  0x76   : > { %p742_p9 = por %p741_p5, %p740_p3 }
  0x77   : > { %549 = vmatmul.mubr.msk.f32.vlgmr.msra.gmra.mrb[0].mxu0 %vm284_vm1, %v274_v8 }
  0x78   : > { %p743_p11 = pnand %p742_p9, %p736_p10 }
 0x14a   : > { %v354_v14 = vpop.f32.mrb[0].mxu0 }
 0x14b   : > { %v355_v15 = vadd.f32 %v354_v14, %v283_v13  ;;  %v550_v16 = vpop.f32.mrb[1].mxu0 }
 0x14d   : > { %v358_v17 = vsel %vm284_vm1, %v355_v15, 0.0  ;;  %v361_v18 = vmul.f32 %v355_v15, %v355_v15 }
 0x14e   : > { %359 = vadd.xlane.f32.xlu0 %v358_v17 }
 0x14f   : > { %v362_v19 = vsel %vm284_vm1, %v361_v18, 0.0 }
 0x152   : > { %363 = vadd.xlane.f32.xlu0 %v362_v19 }
 0x1db   : > { %v360_v20 = vpop.xlane.xlu0 %359 }
 0x1dc   : > { %v365_v21 = vmul.f32 0.03125, %v360_v20 }
 0x1de   : > { %v367_v23 = vmul.f32 %v365_v21, %v365_v21  ;;  %v372_v33 = vsub.f32 %v355_v15, %v365_v21 }
 0x1df   : > { %v364_v22 = vpop.xlane.xlu0 %363 }
 0x1e0   : > { %v366_v24 = vmul.f32 0.03125, %v364_v22 }
 0x1e2   : > { %v368_v25 = vsub.f32 %v366_v24, %v367_v23 }
 0x1e4   : > { %v369_v26 = vmax.f32 %v368_v25, 0.0 }
 0x1e6   : > { %v370_v27 = vadd.f32 1e-05, %v369_v26 }
 0x1e8   : > { %645 = vrsqrt.f32 %v370_v27 }
 0x1f2   : > { %v646_v34 = vpop.eup %645 }
 0x1f3   : > { %v373_v36 = vmul.f32 %v646_v34, %v372_v33 }
 0x1f5   : > { %v378_v37 = vmul.f32 %v377_v32, %v373_v36 }
 0x1f7   : > { %v385_v38 = vadd.f32 %v384_v35, %v378_v37 }
 0x1f9   : > { %386 = vst.msk [vmem:[%s269_s12] sm:$0xff] %vm284_vm1, %v385_v38 }
 0x1fa   : > { %746 = shalt.err (!%p743_p11)
}
 0x1fb   : > { %s747_s21 = scalar_lea.hbm %s1066_s10, 128  ;;  %s751_s8 = scalar_lea.hbm %s1120_s4, 256 }
 0x1fc   : > { %p748_p0 = scmp.ne.s32.totalorder %s1066_s10, %s747_s21  ;;  %p752_p6 = scmp.lt.u32.totalorder %s1066_s10, %s1120_s4 }
 0x1fd   : > { %p753_p7 = scmp.lt.u32.totalorder %s751_s8, %s747_s21  ;;  %p755_p8 = scmp.lt.u32.totalorder %s747_s21, %s1066_s10 }
 0x1fe   : > { %p749_p4 = pnand %p748_p0, %p1135_p12 }
 0x1ff   : > { %p754_p2 = por %p753_p7, %p752_p6 }
 0x200   : > { %p750_p13 = pneg %p749_p4 }
 0x201   : > { %p756_p1 = por %p755_p8, %p754_p2 }
 0x203   : > { %p757_p10 = pnand %p756_p1, %p750_p13 }
 0x205   : > { %760 = shalt.err (!%p757_p10)
}
 0x206   : > { %567 = dma.vmem_to_hbm [thread:$0]  (%p1135_p12), %s1068_s13, 128, %s1066_s10, %s388_s7  }
 0x207 PF: > { %s414_s27 = sand.u32 1, %s799_s15   ;;  %p1136_p3 = scmp.ne.s32.totalorder %s1128_s26, 0 }
 0x208   : > { %p1137_p5 = scmp.ge.s32.totalorder %s819_s20, 2  ;;  %s415_s12 = scalar_lea.sflag [#allocation4], %s414_s27 }
 0x20a   : > { %p581_p9 = pnand %p1137_p5, %p1136_p3 }
 0x20c   : > { %794 = dma.done.wait (!%p581_p9), %s415_s12, 128  }
 0x20d   : > { %796 = vsyncadd (!%p581_p9), %s415_s12, 4294967168  ;;  %s21_s20 = sadd.s32 1, %s819_s20   ;;  %s1138_s15 = smov %s803_s16 }
 0x20e   : > { %p18_p11 = scmp.ge.s32.totalorder %s21_s20, 4   ;;  %s1139_s16 = smov %s807_s17 }
 0x20f   : > { %s1140_s17 = smov %s997_s9  ;;  %s1141_s18 = smov %s815_s19 }
 0x210   : > { %s1142_s19 = smov %s1144_s22  ;;  %20 = sbr.rel (!%p18_p11) target bundleno = 7 (0x7), region = 92 }
 0x217   :  { %420 = vsyncpa [#allocation3], 1 }
 0x218   :  { %422 = vsyncpa [#allocation3 + $0x1], 1 }
 0x219   :  { %423 = vsyncpa [#allocation6], 1 }
 0x21a   :  { %424 = vsyncpa [#allocation4], 1 }
 0x21b   :  { %426 = vsyncpa [#allocation4 + $0x1], 1 }

</bundles_post_ra>
